<compile_context>
chip_gen: v5e
topology: v5e:2x2
jax: 0.10.0
libtpu: 0.0.40
codegen_flags: <defaults>
</compile_context>

<pallas_src>
import functools
from math import gcd

import jax
import jax.numpy as jnp
from jax import lax
from jax.experimental import pallas as pl
from jax.experimental.pallas import tpu as pltpu


def _lcm(a: int, b: int) -> int:
    return a * b // gcd(a, b)


def _has_multiple_tensorcores() -> bool:
    """Best-effort: only v7x-class chips have 2 TensorCores per chip."""
    try:
        d = jax.devices()[0]
        kind = str(getattr(d, "device_kind", "")).lower()
        if "v7" in kind:
            return True
        return int(getattr(d, "num_cores", 1)) > 1
    except Exception:
        return False


def _shortcut_kernel(x_ref, s_ref, o_ref, g_ref, *, bn, c_in, c_out, pad):
    """x_ref: (bn*C, L)  s_ref: (L, M)  o_ref: (bn*Cout, M)  g_ref: (bn*C, M) scratch."""
    # One batched stride-2 gather matmul per grid step (exact: one 1 per selector
    # column, f32 accumulation, cast back is value-preserving for f32/bf16).
    g_ref[...] = jnp.dot(
        x_ref[...], s_ref[...], preferred_element_type=jnp.float32
    ).astype(g_ref.dtype)

    if pad == 0:
        o_ref[...] = g_ref[...]
    else:
        # Zero the whole block once (covers both pad strips), then place each
        # sample's C gathered rows at its channel offset.  Static unroll is fine
        # here: each iteration is a small ref->ref copy (a few vregs live), the
        # batched matmul above is outside the loop.
        o_ref[...] = jnp.zeros(o_ref.shape, o_ref.dtype)
        for b in range(bn):
            o_ref[pl.ds(b * c_out + pad, c_in), :] = g_ref[pl.ds(b * c_in, c_in), :]


@functools.partial(jax.jit, static_argnames=("planes",))
def lambda_layer_forward(x_nchw: jax.Array, planes: int) -> jax.Array:
    """Pallas TPU implementation of
    F.pad(x[:, :, ::2, ::2], (0, 0, 0, 0, planes//4, planes//4), 'constant', 0)."""
    N, C, H, W = x_nchw.shape
    pad = planes // 4
    c_out = C + 2 * pad
    h_out, w_out = (H + 1) // 2, (W + 1) // 2
    L, M = H * W, h_out * w_out
    dtype = x_nchw.dtype
    itemsize = jnp.dtype(dtype).itemsize

    # Constant 0/1 spatial stride-2 selector (shape-only; tiny).
    src = (2 * W * jnp.arange(h_out)[:, None]
           + 2 * jnp.arange(w_out)[None, :]).reshape(-1)            # (M,)
    sel = (jnp.arange(L)[:, None] == src[None, :]).astype(dtype)    # (L, M)

    x_flat = x_nchw.reshape(N * C, L)   # free: collapse of contiguous trailing dims

    # --- batch tile sizing -------------------------------------------------
    # Budget ~12 MiB of VMEM for: double-buffered input/output blocks, the
    # resident selector, and the gather scratch.  Stays comfortably inside the
    # 32 MiB scoped limit on every generation (v7x physical VMEM is 64 MiB).
    budget = 12 * 1024 * 1024
    sel_bytes = L * M * itemsize
    per_sample = 2 * (C * L + c_out * M) * itemsize + C * M * itemsize
    bn_cap = max(1, (budget - sel_bytes) // max(per_sample, 1))
    bn_cap = min(bn_cap, 32)            # bound the in-kernel copy unroll
    if _has_multiple_tensorcores() and N >= 2:
        bn_cap = min(bn_cap, pl.cdiv(N, 2))   # keep >= 2 parallel steps on v7x only
    if bn_cap >= N:
        bn = N                           # single step: block dims == full array dims
    else:
        # Keep the folded sublane dims (bn*C, bn*Cout) 8-aligned for legal blocks.
        m = _lcm(8 // gcd(C, 8), 8 // gcd(c_out, 8))
        bn = max(m, (bn_cap // m) * m)
        bn = min(bn, N)
    grid = (pl.cdiv(N, bn),)             # edge block handled by Pallas masking

    kernel = functools.partial(_shortcut_kernel, bn=bn, c_in=C, c_out=c_out, pad=pad)

    out_flat = pl.pallas_call(
        kernel,
        out_shape=jax.ShapeDtypeStruct((N * c_out, M), dtype),
        grid=grid,
        in_specs=[
            pl.BlockSpec((bn * C, L), lambda n: (n, 0)),
            pl.BlockSpec((L, M), lambda n: (0, 0)),       # resident, fetched once
        ],
        out_specs=pl.BlockSpec((bn * c_out, M), lambda n: (n, 0)),
        scratch_shapes=[pltpu.VMEM((bn * C, M), dtype)],
        compiler_params=pltpu.CompilerParams(
            dimension_semantics=("parallel",),
            vmem_limit_bytes=32 * 1024 * 1024,
        ),
        cost_estimate=pl.CostEstimate(
            flops=0,
            transcendentals=0,
            bytes_accessed=(N * C * L + N * c_out * M + L * M) * itemsize,
        ),
    )(x_flat, sel)

    return out_flat.reshape(N, c_out, h_out, w_out)   # free: trailing-dim splits


def _reference(x_nchw: jax.Array, planes: int) -> jax.Array:
    """Pure-JAX reference of the same lambda (verification only)."""
    pad = planes // 4
    y = x_nchw[:, :, ::2, ::2]
    return jnp.pad(y, ((0, 0), (pad, pad), (0, 0), (0, 0)))


if __name__ == "__main__":
    key = jax.random.PRNGKey(0)

    # Canonical usage: shortcut into a block with 2x channels (fp32, even H/W).
    N, C, H, W = 2, 4, 16, 16
    planes = 2 * C
    x = jax.random.normal(key, (N, C, H, W), dtype=jnp.float32)
    out = jax.block_until_ready(lambda_layer_forward(x, planes=planes))
    ref = _reference(x, planes)
    assert out.shape == ref.shape == (N, C + 2 * (planes // 4), H // 2, W // 2), out.shape
    assert out.dtype == x.dtype
    assert jnp.allclose(out.astype(jnp.float32), ref.astype(jnp.float32),
                        rtol=1e-6, atol=1e-6), "fp32 mismatch vs reference"

    # Odd spatial dims + bf16.
    x2 = jax.random.normal(jax.random.PRNGKey(1), (2, 4, 15, 13), dtype=jnp.bfloat16)
    out2 = jax.block_until_ready(lambda_layer_forward(x2, planes=8))
    ref2 = _reference(x2, 8)
    assert out2.shape == ref2.shape and out2.dtype == x2.dtype, (out2.shape, out2.dtype)
    assert jnp.allclose(out2.astype(jnp.float32), ref2.astype(jnp.float32),
                        rtol=1e-6, atol=1e-6), "bf16/odd-dims mismatch vs reference"

    # Larger, CIFAR-like batch (exercises multi-step grid + cdiv edge handling).
    x3 = jax.random.normal(jax.random.PRNGKey(2), (37, 16, 32, 32), dtype=jnp.float32)
    out3 = jax.block_until_ready(lambda_layer_forward(x3, planes=32))
    ref3 = _reference(x3, 32)
    assert out3.shape == ref3.shape, (out3.shape, ref3.shape)
    assert jnp.allclose(out3, ref3, rtol=1e-6, atol=1e-6), "batched mismatch vs reference"

    print("KERNEL_OK")
</pallas_src>

<mosaic_0001>
module attributes {stable_mosaic.version = 11 : i64} {
  func.func @_shortcut_kernel(%arg0: i32, %arg1: memref<8x256xf32, #tpu.memory_space<vmem>>, %arg2: memref<256x64xf32, #tpu.memory_space<vmem>>, %arg3: memref<16x64xf32, #tpu.memory_space<vmem>>, %arg4: memref<8x64xf32, #tpu.memory_space<vmem>>) attributes {dimension_semantics = [#tpu.dimension_semantics<parallel>], iteration_bounds = array<i64: 1>, scalar_prefetch = 0 : i64, scratch_operands = 1 : i64, tpu.core_type = #tpu.core_type<tc>, window_params = [{transform_indices = @transform_0, window_bounds = array<i64: 8, 256>}, {pipeline_mode = #tpu.pipeline_mode<synchronous>, transform_indices = @transform_1, window_bounds = array<i64: 256, 64>}, {transform_indices = @transform_2, window_bounds = array<i64: 16, 64>}]} {
    %c0 = arith.constant 0 : index
    %c0_0 = arith.constant 0 : index
    %0 = vector.load %arg1[%c0, %c0_0] : memref<8x256xf32, #tpu.memory_space<vmem>>, vector<8x256xf32>
    %c0_1 = arith.constant 0 : index
    %c0_2 = arith.constant 0 : index
    %1 = vector.load %arg2[%c0_1, %c0_2] : memref<256x64xf32, #tpu.memory_space<vmem>>, vector<256x64xf32>
    %cst = arith.constant dense<0.000000e+00> : vector<8x64xf32>
    %2 = tpu.matmul %0, %1, %cst {dimension_numbers = #tpu.dot_dimension_numbers<[1], [0], [0], [1], [0, 0, 1, 1], [], []>} : vector<8x256xf32>, vector<256x64xf32>, vector<8x64xf32> -> vector<8x64xf32>
    %c0_3 = arith.constant 0 : index
    %c0_4 = arith.constant 0 : index
    %3 = vector.load %arg4[%c0_3, %c0_4] : memref<8x64xf32, #tpu.memory_space<vmem>>, vector<8x64xf32>
    tpu.vector_store %arg4[%c0_3, %c0_4], %2 {strides = array<i32>} : memref<8x64xf32, #tpu.memory_space<vmem>>, vector<8x64xf32>,
    %cst_5 = arith.constant 0.000000e+00 : f32
    %4 = vector.broadcast %cst_5 : f32 to vector<16x64xf32>
    %c0_6 = arith.constant 0 : index
    %c0_7 = arith.constant 0 : index
    %5 = vector.load %arg3[%c0_6, %c0_7] : memref<16x64xf32, #tpu.memory_space<vmem>>, vector<16x64xf32>
    tpu.vector_store %arg3[%c0_6, %c0_7], %4 {strides = array<i32>} : memref<16x64xf32, #tpu.memory_space<vmem>>, vector<16x64xf32>,
    %c0_8 = arith.constant 0 : index
    %c0_9 = arith.constant 0 : index
    %6 = vector.load %arg4[%c0_8, %c0_9] : memref<8x64xf32, #tpu.memory_space<vmem>>, vector<4x64xf32>
    %c2 = arith.constant 2 : index
    %c0_10 = arith.constant 0 : index
    %7 = vector.load %arg3[%c2, %c0_10] : memref<16x64xf32, #tpu.memory_space<vmem>>, vector<4x64xf32>
    tpu.vector_store %arg3[%c2, %c0_10], %6 {strides = array<i32>} : memref<16x64xf32, #tpu.memory_space<vmem>>, vector<4x64xf32>,
    %c4 = arith.constant 4 : index
    %c0_11 = arith.constant 0 : index
    %8 = vector.load %arg4[%c4, %c0_11] : memref<8x64xf32, #tpu.memory_space<vmem>>, vector<4x64xf32>
    %c10 = arith.constant 10 : index
    %c0_12 = arith.constant 0 : index
    %9 = vector.load %arg3[%c10, %c0_12] : memref<16x64xf32, #tpu.memory_space<vmem>>, vector<4x64xf32>
    tpu.vector_store %arg3[%c10, %c0_12], %8 {strides = array<i32>} : memref<16x64xf32, #tpu.memory_space<vmem>>, vector<4x64xf32>,
    return
  }
  func.func @transform_0(%arg0: i32) -> (i32, i32) {
    %c0_i32 = arith.constant 0 : i32
    %c0_i32_0 = arith.constant 0 : i32
    return %arg0, %c0_i32 : i32, i32
  }
  func.func @transform_1(%arg0: i32) -> (i32, i32) {
    %c0_i32 = arith.constant 0 : i32
    %c0_i32_0 = arith.constant 0 : i32
    %c0_i32_1 = arith.constant 0 : i32
    return %c0_i32, %c0_i32_0 : i32, i32
  }
  func.func @transform_2(%arg0: i32) -> (i32, i32) {
    %c0_i32 = arith.constant 0 : i32
    %c0_i32_0 = arith.constant 0 : i32
    return %arg0, %c0_i32 : i32, i32
  }
}

</mosaic_0001>

<bundles_post_ra>
// kernel: lambda_layer_forward.1
= control target key start
LH: loop header
LB: loop body
LE: loop exit
PB: predicated region body
PF: predicated region fallthrough
CT: control target
= control target key end

     0   :  { %vm85_vm0 = vcmask 523264   ;;  %v99_v34 = vmov 0.0   ;;  %vm90_vm1 = vcmask 519168   ;;  %s229_s1 = inlined_call_operand.vmem [shape: f32[256,64], index: 1, kind: input, shape index: {}]   ;;  %s230_s0 = inlined_call_operand.vmem [shape: f32[8,256], index: 0, kind: input, shape index: {}]   ;;  %s231_s2 = inlined_call_operand.vmem [shape: f32[16,64], index: 2, kind: output, shape index: {}]  }
   0x1   :  { %v28_v0 = vld [vmem:[%s229_s1 + $0x78] sm:$0xff]  ;;  %v27_v2 = vld [vmem:[%s229_s1 + $0x70] sm:$0xff]  ;;  %v26_v4 = vld [vmem:[%s229_s1 + $0x68] sm:$0xff]  ;;  %87 = vst.msk [vmem:[%s231_s2] sm:$0xff] %vm85_vm0, %v99_v34 }
   0x2   :  { %v44_v1 = vld [vmem:[%s229_s1 + $0xf8] sm:$0xff]  ;;  %45 = vmatpush.msra.mxu0 %v28_v0  ;;  %v43_v3 = vld [vmem:[%s229_s1 + $0xf0] sm:$0xff]  ;;  %v42_v5 = vld [vmem:[%s229_s1 + $0xe8] sm:$0xff]  ;;  %88 = vst.msk [vmem:[%s231_s2 + $0x8] sm:$0xff] %vm85_vm0, %v99_v34 }
   0x3   :  { %65 = vmatpush.msra.mxu1 %v44_v1  ;;  %v25_v6 = vld [vmem:[%s229_s1 + $0x60] sm:$0xff]  ;;  %v24_v8 = vld [vmem:[%s229_s1 + $0x58] sm:$0xff]  ;;  %v23_v10 = vld [vmem:[%s229_s1 + $0x50] sm:$0xff] }
   0x4   :  { %46 = vmatpush.msra.mxu0 %v27_v2  ;;  %v41_v7 = vld [vmem:[%s229_s1 + $0xe0] sm:$0xff]  ;;  %v40_v9 = vld [vmem:[%s229_s1 + $0xd8] sm:$0xff]  ;;  %v39_v11 = vld [vmem:[%s229_s1 + $0xd0] sm:$0xff] }
   0x5   :  { %66 = vmatpush.msra.mxu1 %v43_v3  ;;  %v22_v12 = vld [vmem:[%s229_s1 + $0x48] sm:$0xff]  ;;  %v21_v14 = vld [vmem:[%s229_s1 + $0x40] sm:$0xff]  ;;  %v20_v16 = vld [vmem:[%s229_s1 + $0x38] sm:$0xff] }
   0x6   :  { %47 = vmatpush.msra.mxu0 %v26_v4  ;;  %v38_v13 = vld [vmem:[%s229_s1 + $0xc8] sm:$0xff]  ;;  %v37_v15 = vld [vmem:[%s229_s1 + $0xc0] sm:$0xff]  ;;  %v36_v17 = vld [vmem:[%s229_s1 + $0xb8] sm:$0xff] }
   0x7   :  { %67 = vmatpush.msra.mxu1 %v42_v5  ;;  %v19_v18 = vld [vmem:[%s229_s1 + $0x30] sm:$0xff]  ;;  %v18_v20 = vld [vmem:[%s229_s1 + $0x28] sm:$0xff]  ;;  %v17_v22 = vld [vmem:[%s229_s1 + $0x20] sm:$0xff] }
   0x8   :  { %48 = vmatpush.msra.mxu0 %v25_v6  ;;  %v35_v19 = vld [vmem:[%s229_s1 + $0xb0] sm:$0xff]  ;;  %v34_v21 = vld [vmem:[%s229_s1 + $0xa8] sm:$0xff]  ;;  %v33_v23 = vld [vmem:[%s229_s1 + $0xa0] sm:$0xff] }
   0x9   :  { %68 = vmatpush.msra.mxu1 %v41_v7  ;;  %v16_v24 = vld [vmem:[%s229_s1 + $0x18] sm:$0xff]  ;;  %v15_v26 = vld [vmem:[%s229_s1 + $0x10] sm:$0xff]  ;;  %v14_v28 = vld [vmem:[%s229_s1 + $0x8] sm:$0xff] }
   0xa   :  { %49 = vmatpush.msra.mxu0 %v24_v8  ;;  %v32_v25 = vld [vmem:[%s229_s1 + $0x98] sm:$0xff]  ;;  %v31_v27 = vld [vmem:[%s229_s1 + $0x90] sm:$0xff]  ;;  %v30_v29 = vld [vmem:[%s229_s1 + $0x88] sm:$0xff] }
   0xb   :  { %69 = vmatpush.msra.mxu1 %v40_v9  ;;  %v13_v30 = vld [vmem:[%s229_s1] sm:$0xff]  ;;  %v12_v33 = vld [vmem:[%s230_s0 + $0x8] sm:$0xff] }
   0xc   :  { %50 = vmatpush.msra.mxu0 %v23_v10  ;;  %v29_v31 = vld [vmem:[%s229_s1 + $0x80] sm:$0xff] }
   0xd   :  { %70 = vmatpush.msra.mxu1 %v39_v11  ;;  %v11_v32 = vld [vmem:[%s230_s0] sm:$0xff] }
   0xe   :  { %51 = vmatpush.msra.mxu0 %v22_v12 }
   0xf   :  { %71 = vmatpush.msra.mxu1 %v38_v13 }
  0x10   :  { %52 = vmatpush.msra.mxu0 %v21_v14 }
  0x11   :  { %72 = vmatpush.msra.mxu1 %v37_v15 }
  0x12   :  { %53 = vmatpush.msra.mxu0 %v20_v16 }
  0x13   :  { %73 = vmatpush.msra.mxu1 %v36_v17 }
  0x14   :  { %54 = vmatpush.msra.mxu0 %v19_v18 }
  0x15   :  { %74 = vmatpush.msra.mxu1 %v35_v19 }
  0x16   :  { %55 = vmatpush.msra.mxu0 %v18_v20 }
  0x17   :  { %75 = vmatpush.msra.mxu1 %v34_v21 }
  0x18   :  { %56 = vmatpush.msra.mxu0 %v17_v22 }
  0x19   :  { %76 = vmatpush.msra.mxu1 %v33_v23 }
  0x1a   :  { %57 = vmatpush.msra.mxu0 %v16_v24 }
  0x1b   :  { %77 = vmatpush.msra.mxu1 %v32_v25 }
  0x1c   :  { %58 = vmatpush.msra.mxu0 %v15_v26 }
  0x1d   :  { %78 = vmatpush.msra.mxu1 %v31_v27 }
  0x1e   :  { %59 = vmatpush.msra.mxu0 %v14_v28 }
  0x1f   :  { %79 = vmatpush.msra.mxu1 %v30_v29 }
  0x20   :  { %60 = vmatpush.msra.mxu0 %v13_v30 }
  0x21   :  { %80 = vmatpush.msra.mxu1 %v29_v31  ;;  %61 = vmatmul.f32.vlgmr.msra.gmra.mxu0 %v11_v32 }
  0x22   :  { %81 = vmatmul.f32.vlgmr.msra.gmra.mxu1 %v12_v33 }
  0x9e   :  { %v62_v35 = vpop.f32.mrf.mxu0 }
  0x9f   :  { %v82_v36 = vpop.f32.mrf.mxu1 }
  0xa0   :  { %v83_v37 = vadd.f32 %v82_v36, %v62_v35 }
  0xa2   :  { %86 = vst.msk [vmem:[#allocation2] sm:$0xff] %vm85_vm0, %v83_v37 }
  0xa9   :  { %v89_v38 = vld [vmem:[#allocation2] sm:$0xf]  ;;  %v92_v39 = vld [vmem:[#allocation2 + $0x4] sm:$0xf] }
  0xaa   :  { %91 = vst.msk [vmem:[%s231_s2 + $0x2] sm:$0xf] %vm90_vm1, %v89_v38 }
  0xab   :  { %93 = vst.msk [vmem:[%s231_s2 + $0xa] sm:$0xf] %vm90_vm1, %v92_v39 }

</bundles_post_ra>
